<compile_context>
chip_gen: v7x
topology: tpu7x:2x2x1
jax: 0.10.0
libtpu: 0.0.40
codegen_flags: <defaults>
</compile_context>

<pallas_src>
import jax
import jax.numpy as jnp
from jax.experimental import pallas as pl
from jax.experimental.pallas import tpu as pltpu

MASK_TEMP = 10.0
PRIOR = 0.3
INITIAL_RANK_RATIO = 0.5

_LANE = 128
_DEFAULT_VMEM_BUDGET = 20 * 1024 * 1024     # per-step tiles (safe on v7x's 32 MiB default scope)
_VMEM_LIMIT_CAP = 56 * 1024 * 1024          # stays under v7x's 64 MiB physical VMEM


def _rup(x, m):
    return ((x + m - 1) // m) * m


def _pad_axis(x, axis, target):
    pad = target - x.shape[axis]
    if pad <= 0:
        return x
    widths = [(0, 0)] * x.ndim
    widths[axis] = (0, pad)
    return jnp.pad(x, widths)


def _select_tiles(M, N, R, base_bytes, out_bytes, fact_bytes, m_align, budget):
    """Pick (tm, tn, tk) against a VMEM budget.

    Priority: full R (removes the r grid axis -> acc RMW'd only T times per
    output tile), then full N (U streamed once), then largest tm.
    """
    def bytes_for(tm, tn, tk):
        b = 2 * tm * tn * base_bytes        # base, double-buffered
        b += 2 * tm * tn * out_bytes        # out
        b += 2 * tm * tk * fact_bytes       # U
        b += 2 * tk * tn * fact_bytes       # V_T
        b += 2 * tk * 4                     # s_eff (1, tk) f32
        b += tm * tn * 4                    # f32 accumulator (scratch)
        return b

    n_full = _rup(N, _LANE)
    r_full = _rup(R, _LANE)
    m_full = _rup(M, m_align)

    tk_cands = sorted({c for c in (r_full, 1024, 512, 256, 128) if c <= r_full},
                      reverse=True)
    tn_cands = sorted({c for c in (n_full, 1024, 512, 256, 128) if c <= n_full},
                      reverse=True)
    tm_cands = sorted({m_full} | {c for c in (512, 256, 128, 64, 32, 16, 8)
                                  if m_align <= c < m_full and c % m_align == 0},
                      reverse=True)

    for tk in tk_cands:
        for tn in tn_cands:
            for tm in tm_cands:
                if bytes_for(tm, tn, tk) <= budget:
                    return tm, tn, tk, bytes_for(tm, tn, tk)
    tm, tn, tk = tm_cands[-1], _LANE, _LANE
    return tm, tn, tk, bytes_for(tm, tn, tk)


# ---------------------------------------------------------------------------
# Kernel 1: matrix-parameter merge (SVD low-rank reconstruction + accumulate)
# grid = (P, M//tm, N//tn, T, R//tk); T, R are reduction axes with a resident
# per-(p, i, j) f32 accumulator in VMEM scratch (initialised with base).
# ---------------------------------------------------------------------------
def _matrix_merge_kernel(base_ref, u_ref, seff_ref, vt_ref, out_ref, acc_ref):
    t = pl.program_id(3)
    r = pl.program_id(4)

    @pl.when((t == 0) & (r == 0))
    def _init():
        # Fold base into the accumulator -> no epilogue add, output written once.
        acc_ref[...] = base_ref[0].astype(jnp.float32)

    u = u_ref[0, 0]                 # (tm, tk)   factor dtype (f32 or bf16)
    vt = vt_ref[0, 0]               # (tk, tn)   factor dtype
    s_eff = seff_ref[0, 0]          # (1, tk)    f32, = gate * s * w (precomputed)

    # Scale U columns in f32, round once to the factor dtype for the MXU.
    lhs = (u.astype(jnp.float32) * s_eff).astype(u.dtype)
    acc_ref[...] += jnp.dot(lhs, vt, preferred_element_type=jnp.float32)

    @pl.when((t == pl.num_programs(3) - 1) & (r == pl.num_programs(4) - 1))
    def _fin():
        out_ref[0] = acc_ref[...].astype(out_ref.dtype)


def adarank_matrix_merge(base, u, s, vt, mask_logits, w, *,
                         mask_temp=MASK_TEMP,
                         factor_dtype=None,
                         vmem_budget_bytes=_DEFAULT_VMEM_BUDGET):
    """merged = base + sum_t w[t] * U_t @ diag(gate_t * s_t) @ V_T_t.

    Accepts either a single parameter (base (M,N), u (T,M,R), ...) or a batch
    of same-shaped parameters (base (P,M,N), u (P,T,M,R), ..., w (P,T)); a
    whole batch is merged with one pallas_call (amortises launch overhead and
    keeps both v7x TensorCores busy).
    """
    assert mask_temp > 0, "sign-based straight-through gate requires mask_temp > 0"

    base = jnp.asarray(base)
    u = jnp.asarray(u)
    s = jnp.asarray(s)
    vt = jnp.asarray(vt)
    mask_logits = jnp.asarray(mask_logits)
    w = jnp.asarray(w, jnp.float32)

    squeeze = base.ndim == 2
    if squeeze:
        base, u, s, vt, mask_logits = (base[None], u[None], s[None],
                                       vt[None], mask_logits[None])
    P, M, N = base.shape
    T, R = u.shape[1], u.shape[3]
    if w.ndim == 1:
        w = jnp.broadcast_to(w, (P, T))

    # Straight-through mask forward value: sigmoid(m/temp) > 0.5  <=>  m > 0
    # (temp > 0).  Fold the per-(param, task) merge weight in as well -> one
    # tiny (P, T, R) f32 tensor, computed once outside the grid.
    gate = mask_logits > 0.0
    s_eff = jnp.where(gate, s.astype(jnp.float32), 0.0) * w[:, :, None]

    if factor_dtype is None:
        factor_dtype = u.dtype
    u = u.astype(factor_dtype)
    vt = vt.astype(factor_dtype)
    fact_bytes = jnp.dtype(factor_dtype).itemsize
    m_align = 8 if fact_bytes >= 4 else (16 if fact_bytes == 2 else 32)
    base_bytes = base.dtype.itemsize

    tm, tn, tk, est_bytes = _select_tiles(M, N, R, base_bytes, base_bytes,
                                          fact_bytes, m_align, vmem_budget_bytes)
    M_pad, N_pad, R_pad = _rup(M, tm), _rup(N, tn), _rup(R, tk)

    # Zero-pad on the host: padded ranks have s_eff == 0 (contribute nothing),
    # padded rows/cols are sliced away from the output.
    base_p = _pad_axis(_pad_axis(base, 1, M_pad), 2, N_pad)
    u_p = _pad_axis(_pad_axis(u, 2, M_pad), 3, R_pad)
    vt_p = _pad_axis(_pad_axis(vt, 2, R_pad), 3, N_pad)
    seff_p = _pad_axis(s_eff, 2, R_pad).reshape(P, T, 1, R_pad)

    grid = (P, M_pad // tm, N_pad // tn, T, R_pad // tk)

    flops = 2 * P * T * M_pad * N_pad * R_pad + P * T * M_pad * R_pad
    bytes_accessed = (base_p.size * base_bytes + base_p.size * base_bytes +
                      u_p.size * fact_bytes + vt_p.size * fact_bytes +
                      seff_p.size * 4)
    vmem_limit = int(min(max(2 * est_bytes, 32 * 1024 * 1024), _VMEM_LIMIT_CAP))

    out = pl.pallas_call(
        _matrix_merge_kernel,
        out_shape=jax.ShapeDtypeStruct((P, M_pad, N_pad), base.dtype),
        grid_spec=pltpu.PrefetchScalarGridSpec(
            num_scalar_prefetch=0,
            grid=grid,
            in_specs=[
                pl.BlockSpec((1, tm, tn), lambda p, i, j, t, r: (p, i, j)),       # base
                pl.BlockSpec((1, 1, tm, tk), lambda p, i, j, t, r: (p, t, i, r)),  # U
                pl.BlockSpec((1, 1, 1, tk), lambda p, i, j, t, r: (p, t, 0, r)),   # s_eff
                pl.BlockSpec((1, 1, tk, tn), lambda p, i, j, t, r: (p, t, r, j)),  # V_T
            ],
            out_specs=pl.BlockSpec((1, tm, tn), lambda p, i, j, t, r: (p, i, j)),
            scratch_shapes=[pltpu.VMEM((tm, tn), jnp.float32)],
        ),
        compiler_params=pltpu.CompilerParams(
            dimension_semantics=("parallel", "parallel", "parallel",
                                 "arbitrary", "arbitrary"),
            vmem_limit_bytes=vmem_limit),
        cost_estimate=pl.CostEstimate(flops=int(flops), transcendentals=0,
                                      bytes_accessed=int(bytes_accessed)),
    )(base_p, u_p, seff_p, vt_p)

    out = out[:, :M, :N]
    return out[0] if squeeze else out


# ---------------------------------------------------------------------------
# Kernel 2: non-matrix (bias / LayerNorm) parameter merge, one fused call for
# a whole batch of same-length parameters:
#   out[p] = base[p] + sum_t w[p, t] * tv[p, t]
# ---------------------------------------------------------------------------
def _vector_merge_kernel(w_ref, base_ref, tv_ref, out_ref):
    contrib = jnp.sum(w_ref[...] * tv_ref[...].astype(jnp.float32), axis=1)    # (P, N)
    out_ref[...] = (base_ref[...].astype(jnp.float32) + contrib).astype(out_ref.dtype)


def adarank_vector_merge(base, tv, w):
    """Bias-like merge.  base (P,N) or (N,), tv (P,T,N) or (T,N), w (P,T) or (T,).

    Bias params are tiny, so the whole batch is merged with full-array blocks
    in a single pallas_call (per-parameter launches would be pure overhead).
    """
    base = jnp.asarray(base)
    tv = jnp.asarray(tv)
    w = jnp.asarray(w, jnp.float32)

    squeeze = base.ndim == 1
    if squeeze:
        base, tv = base[None], tv[None]
    P, N = base.shape
    T = tv.shape[1]
    if w.ndim == 1:
        w = jnp.broadcast_to(w, (P, T))
    w3 = w.reshape(P, T, 1)

    out = pl.pallas_call(
        _vector_merge_kernel,
        out_shape=jax.ShapeDtypeStruct((P, N), base.dtype),
        grid=(1,),
        in_specs=[
            pl.BlockSpec((P, T, 1), lambda i: (0, 0, 0)),   # weights
            pl.BlockSpec((P, N), lambda i: (0, 0)),         # base
            pl.BlockSpec((P, T, N), lambda i: (0, 0, 0)),   # task vectors
        ],
        out_specs=pl.BlockSpec((P, N), lambda i: (0, 0)),
    )(w3, base, tv)
    return out[0] if squeeze else out


# ---------------------------------------------------------------------------
# Pure-JAX references (for correctness check)
# ---------------------------------------------------------------------------
def _ref_matrix_merge(base, u, s, vt, m, w, mask_temp):
    gate = (jax.nn.sigmoid(m / mask_temp) > 0.5).astype(s.dtype)
    s_eff = gate * s
    tv = jnp.einsum('tmr,tr,trn->tmn', u, s_eff, vt)
    return base + jnp.einsum('t,tmn->mn', w, tv)


def _ref_vector_merge(base, tv, w):
    return base + jnp.einsum('t,tn->n', w, tv)


def _make_mask(T, R):
    preserved = int(R * INITIAL_RANK_RATIO)
    m = jnp.full((T, R), 0.1, jnp.float32)
    return m.at[:, preserved:].set(-0.1)


if __name__ == "__main__":
    key = jax.random.PRNGKey(0)
    T = 2                                   # number of models to merge

    # ------------------------------------------------------------------
    # Test 1: single matrix param with non-(8,128)-aligned shape
    # (exercises the zero-padding path).
    # ------------------------------------------------------------------
    M, N = 40, 48
    R = min(M, N)
    k0, k1, k2 = jax.random.split(key, 3)

    base_w = (0.02 * jax.random.normal(k0, (M, N))).astype(jnp.float32)
    deltas = (0.01 * jax.random.normal(k1, (T, M, N))).astype(jnp.float32)

    U, S, VT = jnp.linalg.svd(deltas, full_matrices=False)  # __init__: _svd_vanilla (glue, plain JAX)
    U, S, VT = U.astype(jnp.float32), S.astype(jnp.float32), VT.astype(jnp.float32)

    mask_logits = _make_mask(T, R)                           # __init__: mask_init
    merge_w = jnp.full((T,), PRIOR, jnp.float32)             # __init__: merge_weight = prior

    merged_w = adarank_matrix_merge(base_w, U, S, VT, mask_logits, merge_w)
    ref_w = _ref_matrix_merge(base_w, U, S, VT, mask_logits, merge_w, MASK_TEMP)
    jax.block_until_ready(merged_w)
    assert jnp.allclose(merged_w, ref_w, rtol=1e-4, atol=1e-5), "matrix merge mismatch"

    # ------------------------------------------------------------------
    # Test 2: batched merge — two same-shaped layers in one pallas_call
    # (P grid axis 'parallel' -> both v7x cores get work).
    # ------------------------------------------------------------------
    P2, M2, N2 = 2, 256, 256
    R2 = min(M2, N2)
    k3, k4 = jax.random.split(jax.random.fold_in(key, 3), 2)

    base_w2 = (0.02 * jax.random.normal(k3, (P2, M2, N2))).astype(jnp.float32)
    deltas2 = (0.01 * jax.random.normal(k4, (P2, T, M2, N2))).astype(jnp.float32)
    U2, S2, VT2 = jnp.linalg.svd(deltas2, full_matrices=False)
    U2, S2, VT2 = U2.astype(jnp.float32), S2.astype(jnp.float32), VT2.astype(jnp.float32)

    mask_logits2 = jnp.broadcast_to(_make_mask(T, R2), (P2, T, R2))
    merge_w2 = PRIOR * (1.0 + 0.1 * jnp.arange(P2 * T, dtype=jnp.float32).reshape(P2, T))

    merged_w2 = adarank_matrix_merge(base_w2, U2, S2, VT2, mask_logits2, merge_w2)
    ref_w2 = jnp.stack([
        _ref_matrix_merge(base_w2[p], U2[p], S2[p], VT2[p], mask_logits2[p],
                          merge_w2[p], MASK_TEMP)
        for p in range(P2)])
    jax.block_until_ready(merged_w2)
    assert jnp.allclose(merged_w2, ref_w2, rtol=1e-3, atol=1e-4), "batched matrix merge mismatch"

    # ------------------------------------------------------------------
    # Test 3: same data with bf16 factors (halved HBM traffic), f32 accumulate.
    # ------------------------------------------------------------------
    merged_bf16 = adarank_matrix_merge(base_w2, U2, S2, VT2, mask_logits2, merge_w2,
                                       factor_dtype=jnp.bfloat16)
    jax.block_until_ready(merged_bf16)
    assert jnp.allclose(merged_bf16, ref_w2, rtol=1e-2, atol=1e-3), "bf16 matrix merge mismatch"

    # ------------------------------------------------------------------
    # Test 4: non-matrix (bias-like) params — batched and unbatched.
    # ------------------------------------------------------------------
    Pb, Nb = 3, 64
    kb1, kb2 = jax.random.split(jax.random.fold_in(key, 7), 2)
    base_b = (0.02 * jax.random.normal(kb1, (Pb, Nb))).astype(jnp.float32)
    bias_tv = (0.01 * jax.random.normal(kb2, (Pb, T, Nb))).astype(jnp.float32)
    wb = PRIOR * (1.0 + 0.05 * jnp.arange(Pb * T, dtype=jnp.float32).reshape(Pb, T))

    merged_b = adarank_vector_merge(base_b, bias_tv, wb)
    ref_b = jnp.stack([_ref_vector_merge(base_b[p], bias_tv[p], wb[p]) for p in range(Pb)])
    jax.block_until_ready(merged_b)
    assert jnp.allclose(merged_b, ref_b, rtol=1e-4, atol=1e-6), "batched vector merge mismatch"

    merged_b1 = adarank_vector_merge(base_b[0], bias_tv[0], wb[0])
    jax.block_until_ready(merged_b1)
    assert jnp.allclose(merged_b1, ref_b[0], rtol=1e-4, atol=1e-6), "vector merge mismatch"

    print("KERNEL_OK")
</pallas_src>

<mosaic_0001>
module attributes {stable_mosaic.version = 11 : i64} {
  func.func @_matrix_merge_kernel(%arg0: i32, %arg1: i32, %arg2: i32, %arg3: i32, %arg4: i32, %arg5: memref<1x40x128xf32, #tpu.memory_space<vmem>>, %arg6: memref<1x1x40x128xf32, #tpu.memory_space<vmem>>, %arg7: memref<1x1x1x128xf32, #tpu.memory_space<vmem>>, %arg8: memref<1x1x128x128xf32, #tpu.memory_space<vmem>>, %arg9: memref<1x40x128xf32, #tpu.memory_space<vmem>>, %arg10: memref<40x128xf32, #tpu.memory_space<vmem>>) attributes {dimension_semantics = [#tpu.dimension_semantics<parallel>, #tpu.dimension_semantics<parallel>, #tpu.dimension_semantics<parallel>, #tpu.dimension_semantics<arbitrary>, #tpu.dimension_semantics<arbitrary>], iteration_bounds = array<i64: 1, 1, 1, 2, 1>, scalar_prefetch = 0 : i64, scratch_operands = 1 : i64, tpu.core_type = #tpu.core_type<tc>, window_params = [{transform_indices = @transform_0, window_bounds = array<i64: 1, 40, 128>}, {transform_indices = @transform_1, window_bounds = array<i64: 1, 1, 40, 128>}, {transform_indices = @transform_2, window_bounds = array<i64: 1, 1, 1, 128>}, {transform_indices = @transform_3, window_bounds = array<i64: 1, 1, 128, 128>}, {transform_indices = @transform_4, window_bounds = array<i64: 1, 40, 128>}]} {
    %c0_i32 = arith.constant 0 : i32
    %0 = arith.cmpi eq, %arg3, %c0_i32 : i32
    %c0_i32_0 = arith.constant 0 : i32
    %1 = arith.cmpi eq, %arg4, %c0_i32_0 : i32
    %2 = arith.andi %0, %1 : i1
    %3 = arith.extui %2 : i1 to i32
    %c0_i32_1 = arith.constant 0 : i32
    %4 = arith.cmpi ne, %3, %c0_i32_1 : i32
    scf.if %4 {
      %c0_19 = arith.constant 0 : index
      %c0_20 = arith.constant 0 : index
      %c0_21 = arith.constant 0 : index
      %22 = vector.load %arg5[%c0_19, %c0_20, %c0_21] : memref<1x40x128xf32, #tpu.memory_space<vmem>>, vector<1x40x128xf32>
      %23 = vector.shape_cast %22 : vector<1x40x128xf32> to vector<40x128xf32>
      %c0_22 = arith.constant 0 : index
      %c0_23 = arith.constant 0 : index
      %24 = vector.load %arg10[%c0_22, %c0_23] : memref<40x128xf32, #tpu.memory_space<vmem>>, vector<40x128xf32>
      tpu.vector_store %arg10[%c0_22, %c0_23], %23 {strides = array<i32>} : memref<40x128xf32, #tpu.memory_space<vmem>>, vector<40x128xf32>,
    } else {
    }
    %c0 = arith.constant 0 : index
    %c0_2 = arith.constant 0 : index
    %c0_3 = arith.constant 0 : index
    %c0_4 = arith.constant 0 : index
    %5 = vector.load %arg6[%c0, %c0_2, %c0_3, %c0_4] : memref<1x1x40x128xf32, #tpu.memory_space<vmem>>, vector<1x1x40x128xf32>
    %6 = vector.shape_cast %5 : vector<1x1x40x128xf32> to vector<40x128xf32>
    %c0_5 = arith.constant 0 : index
    %c0_6 = arith.constant 0 : index
    %c0_7 = arith.constant 0 : index
    %c0_8 = arith.constant 0 : index
    %7 = vector.load %arg8[%c0_5, %c0_6, %c0_7, %c0_8] : memref<1x1x128x128xf32, #tpu.memory_space<vmem>>, vector<1x1x128x128xf32>
    %8 = vector.shape_cast %7 : vector<1x1x128x128xf32> to vector<128x128xf32>
    %c0_9 = arith.constant 0 : index
    %c0_10 = arith.constant 0 : index
    %c0_11 = arith.constant 0 : index
    %c0_12 = arith.constant 0 : index
    %9 = vector.load %arg7[%c0_9, %c0_10, %c0_11, %c0_12] : memref<1x1x1x128xf32, #tpu.memory_space<vmem>>, vector<1x1x1x128xf32>
    %10 = vector.shape_cast %9 : vector<1x1x1x128xf32> to vector<1x128xf32>
    %11 = vector.broadcast %10 : vector<1x128xf32> to vector<40x128xf32>
    %12 = arith.mulf %6, %11 : vector<40x128xf32>
    %c0_13 = arith.constant 0 : index
    %c0_14 = arith.constant 0 : index
    %13 = vector.load %arg10[%c0_13, %c0_14] : memref<40x128xf32, #tpu.memory_space<vmem>>, vector<40x128xf32>
    %cst = arith.constant dense<0.000000e+00> : vector<40x128xf32>
    %14 = tpu.matmul %12, %8, %cst {dimension_numbers = #tpu.dot_dimension_numbers<[1], [0], [0], [1], [0, 0, 1, 1], [], []>} : vector<40x128xf32>, vector<128x128xf32>, vector<40x128xf32> -> vector<40x128xf32>
    %15 = arith.addf %13, %14 : vector<40x128xf32>
    %c0_15 = arith.constant 0 : index
    %c0_16 = arith.constant 0 : index
    %16 = vector.load %arg10[%c0_15, %c0_16] : memref<40x128xf32, #tpu.memory_space<vmem>>, vector<40x128xf32>
    tpu.vector_store %arg10[%c0_15, %c0_16], %15 {strides = array<i32>} : memref<40x128xf32, #tpu.memory_space<vmem>>, vector<40x128xf32>,
    %c1_i32 = arith.constant 1 : i32
    %17 = arith.cmpi eq, %arg3, %c1_i32 : i32
    %c0_i32_17 = arith.constant 0 : i32
    %18 = arith.cmpi eq, %arg4, %c0_i32_17 : i32
    %19 = arith.andi %17, %18 : i1
    %20 = arith.extui %19 : i1 to i32
    %c0_i32_18 = arith.constant 0 : i32
    %21 = arith.cmpi ne, %20, %c0_i32_18 : i32
    scf.if %21 {
      %c0_19 = arith.constant 0 : index
      %c0_20 = arith.constant 0 : index
      %22 = vector.load %arg10[%c0_19, %c0_20] : memref<40x128xf32, #tpu.memory_space<vmem>>, vector<40x128xf32>
      %c0_21 = arith.constant 0 : index
      %c0_22 = arith.constant 0 : index
      %c0_23 = arith.constant 0 : index
      %23 = vector.load %arg9[%c0_21, %c0_22, %c0_23] : memref<1x40x128xf32, #tpu.memory_space<vmem>>, vector<1x40x128xf32>
      %24 = vector.shape_cast %23 : vector<1x40x128xf32> to vector<40x128xf32>
      %25 = vector.shape_cast %22 : vector<40x128xf32> to vector<1x40x128xf32>
      tpu.vector_store %arg9[%c0_21, %c0_22, %c0_23], %25 {strides = array<i32>} : memref<1x40x128xf32, #tpu.memory_space<vmem>>, vector<1x40x128xf32>,
    } else {
    }
    return
  }
  func.func @transform_0(%arg0: i32, %arg1: i32, %arg2: i32, %arg3: i32, %arg4: i32) -> (i32, i32, i32) {
    %c0_i32 = arith.constant 0 : i32
    return %arg0, %arg1, %arg2 : i32, i32, i32
  }
  func.func @transform_1(%arg0: i32, %arg1: i32, %arg2: i32, %arg3: i32, %arg4: i32) -> (i32, i32, i32, i32) {
    %c0_i32 = arith.constant 0 : i32
    return %arg0, %arg3, %arg1, %arg4 : i32, i32, i32, i32
  }
  func.func @transform_2(%arg0: i32, %arg1: i32, %arg2: i32, %arg3: i32, %arg4: i32) -> (i32, i32, i32, i32) {
    %c0_i32 = arith.constant 0 : i32
    %c0_i32_0 = arith.constant 0 : i32
    return %arg0, %arg3, %c0_i32, %arg4 : i32, i32, i32, i32
  }
  func.func @transform_3(%arg0: i32, %arg1: i32, %arg2: i32, %arg3: i32, %arg4: i32) -> (i32, i32, i32, i32) {
    %c0_i32 = arith.constant 0 : i32
    return %arg0, %arg3, %arg4, %arg2 : i32, i32, i32, i32
  }
  func.func @transform_4(%arg0: i32, %arg1: i32, %arg2: i32, %arg3: i32, %arg4: i32) -> (i32, i32, i32) {
    %c0_i32 = arith.constant 0 : i32
    return %arg0, %arg1, %arg2 : i32, i32, i32
  }
}

</mosaic_0001>

<bundles_post_ra>
// kernel: tpu_custom_call.1
= control target key start
LH: loop header
LB: loop body
LE: loop exit
PB: predicated region body
PF: predicated region fallthrough
CT: control target
= control target key end

     0   :  { %9 = vsyncpa [#allocation4], 0  ;;  %s1414_s0 = inlined_call_operand.hbm [shape: f32[1,40,128], index: 0, kind: input, shape index: {}]   ;;  %s1415_s1 = inlined_call_operand.hbm [shape: f32[1,2,40,128], index: 1, kind: input, shape index: {}]   ;;  %s1416_s2 = inlined_call_operand.vmem [shape: f32[1,2,1,128], index: 2, kind: input, shape index: {}]   ;;  %s1417_s3 = inlined_call_operand.hbm [shape: f32[1,2,128,128], index: 3, kind: input, shape index: {}]   ;;  %s1418_s4 = inlined_call_operand.hbm [shape: f32[1,40,128], index: 4, kind: output, shape index: {}]  }
   0x1   :  { %10 = vsyncpa [#allocation7], 0 }
   0x2   :  { %12 = vsyncpa [#allocation7 + $0x1], 0 }
   0x3   :  { %13 = vsyncpa [#allocation5], 0  ;;  %s1131_s15 = smov 0   ;;  %s1133_s16 = smov 0  }
   0x4   :  { %s1135_s17 = smov 0   ;;  %s1137_s18 = smov 0  }
   0x5   :  { %s1139_s19 = smov 0   ;;  %s1141_s20 = smov 0  }
   0x6 LB: > { %s40_s21 = sadd.s32 1, %s1089_s19  ;;  %s95_s22 = sadd.s32 1, %s1081_s17  ;;  %s1093_s20 = sphi %s1141_s20, %s19_s20   ;;  %s1089_s19 = sphi %s1139_s19, %s1434_s19   ;;  %s1085_s18 = sphi %s1137_s18, %s1433_s18   ;;  %s1081_s17 = sphi %s1135_s17, %s1432_s17   ;;  %s1077_s16 = sphi %s1133_s16, %s1431_s16   ;;  %s1073_s15 = sphi %s1131_s15, %s1430_s15  }
   0x7   : > { %p42_p0 = scmp.ge.s32.totalorder %s40_s21, 2  ;;  %p102_p1 = scmp.ne.s32.totalorder %s1081_s17, %s1077_s16 }
   0x8   : > { %p103_p2 = scmp.eq.s32.totalorder %s1093_s20, 0  ;;  %p860_p5 = scmp.lt.s32.totalorder %s1093_s20, 2 }
   0x9   : > { %s1436_s21 = smov (%p42_p0, %s40_s21), 0  ;;  %s243_s24 = sand.u32 1, %s1093_s20  }
   0xa   : > { %p104_p3 = por %p103_p2, %p102_p1  ;;  %s87_s23 = ssub.s32 %s1089_s19, %s1436_s21 }
   0xb   : > { %p93_p4 = scmp.eq.s32.totalorder %s87_s23, 0  ;;  %s245_s25 = sand.u32 1, %s1081_s17  }
   0xc   : > { %s833_s27 = smul.u32 40, %s245_s25  ;;  %p1177_p6 = pnand %p860_p5, %p104_p3 }
   0xd   : > { %s1174_s26 = scalar_select %p93_p4, %s1081_s17, %s95_s22  }
   0xe   : > { %s834_s28 = smul.u32 640, %s1089_s19  ;;  %s1181_s30 = sshll.u32 %s245_s25, 7 }
   0xf   : > { %s247_s8 = scalar_lea.vmem [#allocation6], %s833_s27  ;;  %s1190_s10 = scalar_lea.sflag [#allocation7], %s243_s24 }
  0x10   : > { %s1186_s7 = scalar_lea.hbm %s1415_s1, %s834_s28  ;;  %s259_s9 = sshll.u32 %s247_s8, 4  ;;  %s1188_s9 = int_to_ptr.vmem [resolvable:$true] %s259_s9 }
  0x11   : > { %s921_s11 = scalar_lea.hbm %s1186_s7, 640  ;;  %p923_p8 = pneg %p1177_p6 }
  0x12   : > { %p922_p7 = scmp.ne.s32.totalorder %s1186_s7, %s921_s11  ;;  %s926_s14 = scalar_lea.hbm %s1415_s1, 1280 }
  0x13   : > { %p927_p11 = scmp.lt.u32.totalorder %s1186_s7, %s1415_s1  ;;  %p928_p12 = scmp.lt.u32.totalorder %s926_s14, %s921_s11 }
  0x14   : > { %p924_p9 = pnand %p923_p8, %p922_p7  ;;  %p930_p0 = scmp.lt.u32.totalorder %s921_s11, %s1186_s7 }
  0x15   : > { %p929_p13 = por %p928_p12, %p927_p11 }
  0x16   : > { %p925_p10 = pneg %p924_p9 }
  0x17   : > { %p931_p1 = por %p930_p0, %p929_p13 }
  0x19   : > { %p932_p2 = pnand %p931_p1, %p925_p10 }
  0x1b   : > { %935 = shalt.err (!%p932_p2)
}
  0x1c   : > { %s936_s24 = scalar_lea.vmem %s1188_s9, 640  ;;  %s1095_s25 = smov [#allocation6]  }
  0x1d   : > { %p937_p3 = scmp.ne.s32.totalorder %s1188_s9, %s936_s24  ;;  %s941_s27 = sshll.u32 %s1095_s25, 4  ;;  %s942_s27 = int_to_ptr.vmem [resolvable:$false] %s941_s27 }
  0x1e   : > { %s943_s28 = scalar_lea.vmem %s942_s27, 1280  ;;  %p944_p7 = scmp.lt.s32.totalorder %s1188_s9, %s942_s27 }
  0x1f   : > { %p939_p4 = pnand %p937_p3, %p923_p8  ;;  %p945_p9 = scmp.lt.s32.totalorder %s943_s28, %s936_s24 }
  0x21   : > { %p940_p5 = pneg %p939_p4  ;;  %p946_p11 = por %p945_p9, %p944_p7 }
  0x23   : > { %p947_p12 = pnand %p946_p11, %p940_p5 }
  0x25   : > { %950 = shalt.err (!%p947_p12)
}
  0x26   : > { %s1096_s5 = smov 128   ;;  %s1097_s6 = smov 8  }
  0x27   : > { %855 = dma.hbm_to_vmem [thread:$0]  (!%p1177_p6), %s1186_s7, 640, %s1188_s9, %s1190_s10, %s1096_s5, %s1096_s5, %s1097_s6  }
  0x28   : > { %s1222_s8 = sadd.s32 4294967295, %s1093_s20   ;;  %p108_p10 = scmp.ne.s32.totalorder %s1077_s16, %s1073_s15 }
  0x29   : > { %p1419_p13 = scmp.eq.s32.totalorder %s1222_s8, 0  ;;  %p705_p0 = scmp.ge.s32.totalorder %s1093_s20, 1 }
  0x2a   : > { %p211_p1 = scmp.lt.s32.totalorder %s1093_s20, 3  ;;  %s1098_s7 = smov [#allocation3]  }
  0x2b   : > { %p1231_p2 = por %p1419_p13, %p108_p10  ;;  %s229_s9 = sshll.u32 %s1098_s7, 4  ;;  %s1242_s9 = int_to_ptr.vmem [resolvable:$true] %s229_s9 }
  0x2c   : > { %p1235_p3 = pnand %p705_p0, %p211_p1  ;;  %s722_s13 = sshll.u32 %s1089_s19, 11 }
  0x2d   : > { %s1423_s11 = scalar_select %p1231_p2, 1, 0 }
  0x2e   : > { %s1424_s12 = scalar_select %p1235_p3, 1, 0 }
  0x2f   : > { %p848_p4 = pneg %p1235_p3  ;;  %s1247_s22 = scalar_lea.hbm %s1417_s3, %s722_s13 }
  0x30   : > { %s286_s23 = scalar_lea.vmem [#allocation8], %s1181_s30  ;;  %s951_s27 = scalar_lea.hbm %s1247_s22, 2048 }
  0x31   : > { %s298_s24 = sshll.u32 %s286_s23, 4  ;;  %p1252_p5 = pnand %p848_p4, %p1419_p13  ;;  %s1256_s24 = int_to_ptr.vmem [resolvable:$true] %s298_s24 }
  0x32   : > { %p952_p7 = scmp.ne.s32.totalorder %s1247_s22, %s951_s27  ;;  %s956_s13 = scalar_lea.hbm %s1417_s3, 4096 }
  0x33   : > { %p957_p12 = scmp.lt.u32.totalorder %s1247_s22, %s1417_s3  ;;  %p958_p10 = scmp.lt.u32.totalorder %s956_s13, %s951_s27 }
  0x34   : > { %p954_p9 = pnand %p952_p7, %p923_p8  ;;  %p960_p1 = scmp.lt.u32.totalorder %s951_s27, %s1247_s22 }
  0x35   : > { %p959_p0 = por %p958_p10, %p957_p12 }
  0x36   : > { %p955_p11 = pneg %p954_p9 }
  0x37   : > { %p961_p4 = por %p960_p1, %p959_p0 }
  0x39   : > { %p962_p13 = pnand %p961_p4, %p955_p11 }
  0x3b   : > { %965 = shalt.err (!%p962_p13)
}
  0x3c   : > { %s966_s14 = scalar_lea.vmem %s1256_s24, 2048  ;;  %s1099_s23 = smov [#allocation8]  }
  0x3d   : > { %p967_p7 = scmp.ne.s32.totalorder %s1256_s24, %s966_s14  ;;  %s971_s28 = sshll.u32 %s1099_s23, 4  ;;  %s972_s28 = int_to_ptr.vmem [resolvable:$false] %s971_s28 }
  0x3e   : > { %s973_s7 = scalar_lea.vmem %s972_s28, 4096  ;;  %p974_p3 = scmp.lt.s32.totalorder %s1256_s24, %s972_s28 }
  0x3f   : > { %p969_p9 = pnand %p967_p7, %p923_p8  ;;  %p975_p12 = scmp.lt.s32.totalorder %s973_s7, %s966_s14 }
  0x41   : > { %p970_p2 = pneg %p969_p9  ;;  %p976_p10 = por %p975_p12, %p974_p3 }
  0x43   : > { %p977_p0 = pnand %p976_p10, %p970_p2 }
  0x45   : > { %980 = shalt.err (!%p977_p0)
}
  0x46   : > { %858 = dma.hbm_to_vmem [thread:$0]  (!%p1177_p6), %s1247_s22, 2048, %s1256_s24, %s1190_s10, %s1096_s5, %s1096_s5, %s1097_s6  }
  0x47   : > { %s981_s15 = scalar_lea.hbm %s1414_s0, 640  ;;  %p983_p13 = pneg %p1252_p5 }
  0x48   : > { %p982_p8 = scmp.ne.s32.totalorder %s1414_s0, %s981_s15  ;;  %p988_p11 = scmp.lt.u32.totalorder %s981_s15, %s1414_s0 }
  0x4a   : > { %p984_p2 = pnand %p983_p13, %p982_p8 }
  0x4c   : > { %p985_p3 = pneg %p984_p2 }
  0x4e   : > { %p990_p1 = pnand %p988_p11, %p985_p3 }
  0x50   : > { %993 = shalt.err (!%p990_p1)
}
  0x51   : > { %s994_s10 = scalar_lea.vmem %s1242_s9, 640  ;;  %p1002_p9 = scmp.lt.s32.totalorder %s1242_s9, %s1242_s9 }
  0x52   : > { %p995_p6 = scmp.ne.s32.totalorder %s1242_s9, %s994_s10  ;;  %p1003_p12 = scmp.lt.s32.totalorder %s994_s10, %s994_s10 }
  0x54   : > { %p997_p4 = pnand %p995_p6, %p983_p13  ;;  %p1004_p10 = por %p1003_p12, %p1002_p9 }
  0x56   : > { %p998_p7 = pneg %p997_p4 }
  0x58   : > { %p1005_p0 = pnand %p1004_p10, %p998_p7 }
  0x5a   : > { %1008 = shalt.err (!%p1005_p0)
}
  0x5b   : > { %851 = dma.hbm_to_vmem [thread:$0]  (!%p1252_p5), %s1414_s0, 640, %s1242_s9, [#allocation4], %s1096_s5, %s1096_s5, %s1097_s6  }
  0x5c   : > { %p1426_p8 = scmp.ne.s32.totalorder %s1424_s12, 0 }
  0x5d   : > { %p1427_p13 = scmp.eq.s32.totalorder (!%p1426_p8), %s1222_s8, 0 }
  0x5e   : > { %310 = sbr.rel (%p1426_p8) target bundleno = 408 (0x198), region = 36 }
  0x65   : > { %1060 = dma.done.wait (%p1427_p13), [#allocation4], 640   ;;  %p1428_p2 = pmov %p1427_p13 }
  0x66   : > { %s316_s25 = sand.u32 1, %s1222_s8   ;;  %s318_s28 = sand.u32 1, %s1077_s16  }
  0x67   : > { %1062 = vsyncadd (%p1428_p2), [#allocation4], 4294966656  ;;  %s835_s7 = smul.u32 40, %s318_s28  ;;  %s317_s27 = scalar_lea.sflag [#allocation7], %s316_s25 }
  0x68   : > { %p1429_p3 = scmp.ne.s32.totalorder %s1423_s11, 0 }
  0x69   : > { %s1317_s13 = scalar_lea.vmem [#allocation6], %s835_s7 }
  0x6a   : > { %1064 = dma.done.wait (%p1429_p3), %s317_s27, 2688  }
  0x6b   : > { %1066 = vsyncadd (%p1429_p3), %s317_s27, 4294964608  ;;  %s714_s5 = sshll.u32 %s318_s28, 7  ;;  %p368_p5 = scmp.lt.s32.totalorder %s1085_s18, 1 }
  0x6c   : > { %p378_p11 = scmp.eq.s32.totalorder %s1085_s18, 0  ;;  %s1332_s30 = scalar_lea.vmem [#allocation8], %s714_s5 }
  0x6d   : > { %s1326_s6 = scalar_select %p368_p5, %s1085_s18, 1 }
  0x6e   : > { %383 = sbr.rel (!%p378_p11) target bundleno = 117 (0x75), region = 52  ;;  %v384_v0 = vld [vmem:[#allocation3] sm:$0xff] (%p378_p11)  ;;  %v385_v1 = vld [vmem:[#allocation3 + $0x8] sm:$0xff] (%p378_p11)  ;;  %v386_v2 = vld [vmem:[#allocation3 + $0x10] sm:$0xff] (%p378_p11) }
  0x6f   : > { %s375_s15 = scalar_lea.vmem %s1416_s2, %s1326_s6  ;;  %389 = vst [vmem:[#allocation2] sm:$0xff] (%p378_p11), %v384_v0  ;;  %390 = vst [vmem:[#allocation2 + $0x8] sm:$0xff] (%p378_p11), %v385_v1  ;;  %v387_v3 = vld [vmem:[#allocation3 + $0x18] sm:$0xff] (%p378_p11)  ;;  %v388_v4 = vld [vmem:[#allocation3 + $0x20] sm:$0xff] (%p378_p11) }
  0x70   : > { %391 = vst [vmem:[#allocation2 + $0x10] sm:$0xff] (%p378_p11), %v386_v2  ;;  %392 = vst [vmem:[#allocation2 + $0x18] sm:$0xff] (%p378_p11), %v387_v3 }
  0x71   : > { %393 = vst [vmem:[#allocation2 + $0x20] sm:$0xff] (%p378_p11), %v388_v4 }
  0x75 PF: > { %v399_v5 = vld [vmem:[%s1332_s30] sm:$0xff]  ;;  %v400_v6 = vld [vmem:[%s1332_s30 + $0x8] sm:$0xff]  ;;  %v401_v7 = vld [vmem:[%s1332_s30 + $0x10] sm:$0xff]  ;;  %v1100_v8 = vmov 0.0|0.0   ;;  %vm1101_vm0 = vmmov 0   ;;  %v1102_v11 = vmov 0.0  }
  0x76   : > { %793 = vmatprep.subr.bf16.mxu0 %v1100_v8  ;;  %v794_v9 = vpack.c.bf16 %v400_v6, %v399_v5  ;;  %817 = vmatprep.subr.bf16.mxu1 %v1100_v8  ;;  %v402_v10 = vld [vmem:[%s1332_s30 + $0x18] sm:$0xff]  ;;  %v403_v13 = vld [vmem:[%s1332_s30 + $0x20] sm:$0xff]  ;;  %v404_v14 = vld [vmem:[%s1332_s30 + $0x28] sm:$0xff]  ;;  %p532_p1 = scmp.eq.s32.totalorder %s1085_s18, 1 }
  0x77   : > { %778 = vmatprep.mubr.msk.f32.mxu0 %vm1101_vm0, %v1102_v11  ;;  %787 = vmatprep.mubr.msk.f32.mxu1 %vm1101_vm0, %v1102_v11  ;;  %v797_v12 = vpack.c.bf16 %v402_v10, %v401_v7  ;;  %v800_v15 = vpack.c.bf16 %v404_v14, %v403_v13  ;;  %v405_v16 = vld [vmem:[%s1332_s30 + $0x30] sm:$0xff]  ;;  %v406_v17 = vld [vmem:[%s1332_s30 + $0x38] sm:$0xff]  ;;  %v407_v19 = vld [vmem:[%s1332_s30 + $0x40] sm:$0xff] }
  0x78   : > { %795 = vmatpush3.bf16.msra.mxu0 %v794_v9  ;;  %825 = vmatpush3.bf16.msra.mxu1 %v794_v9  ;;  %v803_v18 = vpack.c.bf16 %v406_v17, %v405_v16  ;;  %v408_v20 = vld [vmem:[%s1332_s30 + $0x48] sm:$0xff]  ;;  %v409_v22 = vld [vmem:[%s1332_s30 + $0x50] sm:$0xff]  ;;  %v410_v23 = vld [vmem:[%s1332_s30 + $0x58] sm:$0xff] }
  0x79   : > { %796 = vmatprep.subr.bf16.mxu0 %v1100_v8  ;;  %818 = vmatprep.subr.bf16.mxu1 %v1100_v8  ;;  %v806_v21 = vpack.c.bf16 %v408_v20, %v407_v19  ;;  %v809_v24 = vpack.c.bf16 %v410_v23, %v409_v22  ;;  %v411_v25 = vld [vmem:[%s1332_s30 + $0x60] sm:$0xff]  ;;  %v412_v26 = vld [vmem:[%s1332_s30 + $0x68] sm:$0xff]  ;;  %v413_v28 = vld [vmem:[%s1332_s30 + $0x70] sm:$0xff] }
  0x7a   : > { %v812_v27 = vpack.c.bf16 %v412_v26, %v411_v25  ;;  %v414_v29 = vld [vmem:[%s1332_s30 + $0x78] sm:$0xff]  ;;  %v716_v32 = vld [vmem:[%s375_s15] ss:$0 sm:$0xff]  ;;  %v397_v33 = vld [vmem:[%s1317_s13 + $0x18] sm:$0xff] }
  0x7b   : > { %v815_v30 = vpack.c.bf16 %v414_v29, %v413_v28  ;;  %v394_v31 = vld [vmem:[%s1317_s13] sm:$0xff]  ;;  %v425_v35 = vmul.f32 %v716_v32, %v397_v33  ;;  %v395_v36 = vld [vmem:[%s1317_s13 + $0x8] sm:$0xff]  ;;  %v396_v40 = vld [vmem:[%s1317_s13 + $0x10] sm:$0xff] }
  0x7c   : > { %798 = vmatpush3.bf16.msra.mxu0 %v797_v12  ;;  %826 = vmatpush3.bf16.msra.mxu1 %v797_v12  ;;  %v422_v34 = vmul.f32 %v716_v32, %v394_v31  ;;  %v398_v37 = vld [vmem:[%s1317_s13 + $0x20] sm:$0xff]  ;;  %v423_v38 = vmul.f32 %v716_v32, %v395_v36  ;;  %v424_v41 = vmul.f32 %v716_v32, %v396_v40  ;;  %v427_v42 = vld [vmem:[#allocation2] sm:$0xff]  ;;  %v428_v50 = vld [vmem:[#allocation2 + $0x8] sm:$0xff] }
  0x7d   : > { %799 = vmatprep.subr.bf16.mxu0 %v1100_v8  ;;  %819 = vmatprep.subr.bf16.mxu1 %v1100_v8  ;;  %v426_v39 = vmul.f32 %v716_v32, %v398_v37  ;;  %v430_v43 = vld [vmem:[#allocation2 + $0x18] sm:$0xff]  ;;  %v431_v51 = vld [vmem:[#allocation2 + $0x20] sm:$0xff]  ;;  %v429_v58 = vld [vmem:[#allocation2 + $0x10] sm:$0xff] }
  0x80   : > { %801 = vmatpush3.bf16.msra.mxu0 %v800_v15  ;;  %827 = vmatpush3.bf16.msra.mxu1 %v800_v15 }
  0x81   : > { %802 = vmatprep.subr.bf16.mxu0 %v1100_v8  ;;  %820 = vmatprep.subr.bf16.mxu1 %v1100_v8 }
  0x84   : > { %804 = vmatpush3.bf16.msra.mxu0 %v803_v18  ;;  %828 = vmatpush3.bf16.msra.mxu1 %v803_v18 }
  0x85   : > { %805 = vmatprep.subr.bf16.mxu0 %v1100_v8  ;;  %821 = vmatprep.subr.bf16.mxu1 %v1100_v8 }
  0x88   : > { %807 = vmatpush3.bf16.msra.mxu0 %v806_v21  ;;  %829 = vmatpush3.bf16.msra.mxu1 %v806_v21 }
  0x89   : > { %808 = vmatprep.subr.bf16.mxu0 %v1100_v8  ;;  %822 = vmatprep.subr.bf16.mxu1 %v1100_v8 }
  0x8c   : > { %810 = vmatpush3.bf16.msra.mxu0 %v809_v24  ;;  %830 = vmatpush3.bf16.msra.mxu1 %v809_v24 }
  0x8d   : > { %811 = vmatprep.subr.bf16.mxu0 %v1100_v8  ;;  %823 = vmatprep.subr.bf16.mxu1 %v1100_v8 }
  0x90   : > { %813 = vmatpush3.bf16.msra.mxu0 %v812_v27  ;;  %831 = vmatpush3.bf16.msra.mxu1 %v812_v27 }
  0x91   : > { %814 = vmatprep.subr.bf16.mxu0 %v1100_v8  ;;  %824 = vmatprep.subr.bf16.mxu1 %v1100_v8 }
  0x94   : > { %816 = vmatpush3.bf16.msra.mxu0 %v815_v30  ;;  %832 = vmatpush3.bf16.msra.mxu1 %v815_v30 }
  0x97   : > { %779 = vmatmul.mubr.f32.vlgmr.msra.gmra.mrb[0].mxu0 %v422_v34  ;;  %788 = vmatmul.mubr.f32.vlgmr.msra.gmra.mrb[0].mxu1 %v425_v35 }
  0x98   : > { %781 = vmatprep.mubr.msk.f32.mxu0 %vm1101_vm0, %v1102_v11  ;;  %790 = vmatprep.mubr.msk.f32.mxu1 %vm1101_vm0, %v1102_v11 }
  0x9b   : > { %782 = vmatmul.mubr.f32.gmra.mrb[2].mxu0 %v423_v38  ;;  %791 = vmatmul.mubr.f32.gmra.mrb[2].mxu1 %v426_v39 }
  0x9c   : > { %784 = vmatprep.mubr.msk.f32.mxu0 %vm1101_vm0, %v1102_v11 }
  0x9f   : > { %785 = vmatmul.mubr.f32.gmra.mrb[4].mxu0 %v424_v41 }
 0x16a   : > { %v498_v44 = vpop.f32.mrb[0].mxu0  ;;  %v513_v45 = vpop.f32.mrb[0].mxu1 }
 0x16b   : > { %v522_v46 = vadd.f32 %v498_v44, %v427_v42  ;;  %v780_v47 = vpop.f32.mrb[1].mxu0  ;;  %v525_v48 = vadd.f32 %v513_v45, %v430_v43  ;;  %v789_v49 = vpop.f32.mrb[1].mxu1 }
 0x16d   : > { %527 = vst [vmem:[#allocation2] sm:$0xff] %v522_v46  ;;  %530 = vst [vmem:[#allocation2 + $0x18] sm:$0xff] %v525_v48 }
 0x16e   : > { %v503_v52 = vpop.f32.mrb[2].mxu0  ;;  %v518_v53 = vpop.f32.mrb[2].mxu1 }
 0x16f   : > { %v523_v54 = vadd.f32 %v503_v52, %v428_v50  ;;  %v783_v55 = vpop.f32.mrb[3].mxu0  ;;  %v526_v56 = vadd.f32 %v518_v53, %v431_v51  ;;  %v792_v57 = vpop.f32.mrb[3].mxu1  ;;  %536 = sbr.rel (!%p532_p1) target bundleno = 382 (0x17e), region = 56 }
 0x171   : > { %528 = vst [vmem:[#allocation2 + $0x8] sm:$0xff] %v523_v54  ;;  %531 = vst [vmem:[#allocation2 + $0x20] sm:$0xff] %v526_v56 }
 0x172   : > { %v508_v59 = vpop.f32.mrb[4].mxu0 }
 0x173   : > { %v524_v60 = vadd.f32 %v508_v59, %v429_v58  ;;  %v786_v61 = vpop.f32.mrb[5].mxu0 }
 0x174   : > { %v537_v62 = vld [vmem:[#allocation2] sm:$0xff] (%p532_p1)  ;;  %v540_v1 = vld [vmem:[#allocation2 + $0x18] sm:$0xff] (%p532_p1) }
 0x175   : > { %529 = vst [vmem:[#allocation2 + $0x10] sm:$0xff] %v524_v60  ;;  %542 = vst [vmem:[#allocation9] sm:$0xff] (%p532_p1), %v537_v62 }
 0x176   : > { %545 = vst [vmem:[#allocation9 + $0x18] sm:$0xff] %v540_v1 }
 0x178   : > { %v538_v63 = vld [vmem:[#allocation2 + $0x8] sm:$0xff]  ;;  %v541_v2 = vld [vmem:[#allocation2 + $0x20] sm:$0xff] }
 0x179   : > { %543 = vst [vmem:[#allocation9 + $0x8] sm:$0xff] %v538_v63  ;;  %546 = vst [vmem:[#allocation9 + $0x20] sm:$0xff] %v541_v2 }
 0x17c   : > { %v539_v0 = vld [vmem:[#allocation2 + $0x10] sm:$0xff] }
 0x17d   : > { %544 = vst [vmem:[#allocation9 + $0x10] sm:$0xff] %v539_v0 }
 0x17e PF: > { %p862_p6 = scmp.eq.s32.totalorder %s1222_s8, 1  ;;  %s1103_s29 = smov [#allocation9]  }
 0x17f   : > { %s559_s14 = sshll.u32 %s1103_s29, 4  ;;  %s560_s14 = int_to_ptr.vmem [resolvable:$true] %s559_s14 }
 0x180   : > { %s1009_s10 = scalar_lea.vmem %s560_s14, 640  ;;  %p1016_p12 = scmp.lt.s32.totalorder %s560_s14, %s560_s14 }
 0x181   : > { %p1010_p4 = scmp.ne.s32.totalorder %s560_s14, %s1009_s10  ;;  %p1017_p10 = scmp.lt.s32.totalorder %s1009_s10, %s1009_s10 }
 0x183   : > { %p1011_p7 = pnand %p1010_p4, %p862_p6  ;;  %p1018_p0 = por %p1017_p10, %p1016_p12 }
 0x185   : > { %p1012_p9 = pneg %p1011_p7 }
 0x187   : > { %p1019_p8 = pnand %p1018_p0, %p1012_p9 }
 0x189   : > { %1022 = shalt.err (!%p1019_p8)
}
 0x18a   : > { %s1023_s24 = scalar_lea.hbm %s1418_s4, 640 }
 0x18b   : > { %p1024_p13 = scmp.ne.s32.totalorder %s1418_s4, %s1023_s24  ;;  %p1029_p5 = scmp.lt.u32.totalorder %s1023_s24, %s1418_s4 }
 0x18d   : > { %p1025_p2 = pnand %p1024_p13, %p862_p6 }
 0x18f   : > { %p1026_p3 = pneg %p1025_p2 }
 0x191   : > { %p1031_p11 = pnand %p1029_p5, %p1026_p3 }
 0x193   : > { %1034 = shalt.err (!%p1031_p11)
}
 0x194   : > { %s1104_s13 = smov 128   ;;  %s1105_s5 = smov 8  }
 0x195   : > { %845 = dma.vmem_to_hbm [thread:$0]  (%p862_p6), %s560_s14, 640, %s1418_s4, [#allocation5], %s1104_s13, %s1104_s13, %s1105_s5  }
 0x196   : > { %1068 = dma.done.wait (%p862_p6), [#allocation5], 640  }
 0x197   : > { %1070 = vsyncadd (%p862_p6), [#allocation5], 4294966656 }
 0x198 PF: > { %s19_s20 = sadd.s32 1, %s1093_s20   ;;  %s1430_s15 = smov %s1077_s16 }
 0x199   : > { %p16_p1 = scmp.ge.s32.totalorder %s19_s20, 4   ;;  %s1431_s16 = smov %s1081_s17 }
 0x19a   : > { %s1432_s17 = smov %s1174_s26  ;;  %s1433_s18 = smov %s1089_s19 }
 0x19b   : > { %s1434_s19 = smov %s1436_s21  ;;  %18 = sbr.rel (!%p16_p1) target bundleno = 6 (0x6), region = 102 }
 0x1a2   :  { %575 = vsyncpa [#allocation4], 1 }
 0x1a3   :  { %577 = vsyncpa [#allocation4 + $0x1], 1 }
 0x1a4   :  { %578 = vsyncpa [#allocation7], 1 }
 0x1a5   :  { %580 = vsyncpa [#allocation7 + $0x1], 1 }
 0x1a6   :  { %581 = vsyncpa [#allocation5], 1 }
 0x1a7   :  { %583 = vsyncpa [#allocation5 + $0x1], 1 }

</bundles_post_ra>
